<compile_context>
chip_gen: v7x
topology: tpu7x:2x2x1
jax: 0.10.0
libtpu: 0.0.40
codegen_flags: <defaults>
</compile_context>

<pallas_src>
import functools

import jax
import jax.numpy as jnp
from jax import lax
from jax.experimental import pallas as pl
from jax.experimental.pallas import tpu as pltpu

IN_FEATURES = 511
HIDDEN = 32
OUT_FEATURES = 2


def _round_up(n, m):
    return ((n + m - 1) // m) * m


def mlp_kernel(x_ref, w1_ref, b1_ref, w2_ref, b2_ref, o_ref):
    # fc1: [tb, 511] @ [511, 32] + [1, 32] -> ReLU   (MXU + VPU)
    h = jnp.dot(x_ref[...], w1_ref[...], preferred_element_type=jnp.float32)
    h = jnp.maximum(h + b1_ref[...], 0.0)
    # fc2, computed transposed so the output block is lane-dense:
    #   y_t[o, b] = sum_k w2[k, o] * h[b, k]   -> shape [2, tb]
    y_t = lax.dot_general(
        w2_ref[...], h,
        dimension_numbers=(((0,), (1,)), ((), ())),
        preferred_element_type=jnp.float32)
    o_ref[...] = (y_t + b2_ref[...]).astype(o_ref.dtype)


@functools.partial(jax.jit, static_argnames=("block_b",))
def improved_nn_forward(x, w1_t, b1, w2_t, b2, *, block_b=2048):
    """x: [B, 511] float32; returns [B, 2] float32 (PyTorch ImprovedNN forward)."""
    B = x.shape[0]

    # Batch tile: single full-extent block for small B (block dims == array
    # dims satisfy the (8,128) rule), otherwise a lane-/sublane-aligned tile.
    if B <= block_b:
        tb = B
    else:
        tb = _round_up(block_b, 128)   # output lane dim & x sublane dim aligned
    grid = (pl.cdiv(B, tb),)

    b1_2d = b1.reshape(1, HIDDEN)
    b2_2d = b2.reshape(OUT_FEATURES, 1)

    flops = 2 * B * IN_FEATURES * HIDDEN + 2 * B * HIDDEN * OUT_FEATURES
    bytes_accessed = (
        B * IN_FEATURES * 4                # x read (dominant)
        + IN_FEATURES * HIDDEN * 4         # w1
        + HIDDEN * 4                       # b1
        + HIDDEN * OUT_FEATURES * 4        # w2
        + OUT_FEATURES * 4                 # b2
        + B * OUT_FEATURES * 4             # output write
    )

    # Conservative double-buffered VMEM footprint; only raise the scoped limit
    # if it would blow the v5e 16 MiB default (cap leaves headroom on v7x).
    x_block_bytes = tb * _round_up(IN_FEATURES, 128) * 4
    out_block_bytes = _round_up(OUT_FEATURES, 8) * _round_up(tb, 128) * 4
    w_bytes = (_round_up(IN_FEATURES, 8) * 128 + 8 * 128 + 32 * 128 + 8 * 128) * 4
    vmem_est = 2 * (x_block_bytes + out_block_bytes + w_bytes)
    cp_kwargs = {}
    if vmem_est > (12 << 20):
        cp_kwargs["vmem_limit_bytes"] = min(vmem_est + (8 << 20), 48 << 20)

    out_t = pl.pallas_call(
        mlp_kernel,
        out_shape=jax.ShapeDtypeStruct((OUT_FEATURES, B), jnp.float32),
        grid_spec=pl.GridSpec(
            grid=grid,
            in_specs=[
                pl.BlockSpec((tb, IN_FEATURES), lambda i: (i, 0)),       # x tile
                pl.BlockSpec((IN_FEATURES, HIDDEN), lambda i: (0, 0)),   # w1 (resident)
                pl.BlockSpec((1, HIDDEN), lambda i: (0, 0)),             # b1
                pl.BlockSpec((HIDDEN, OUT_FEATURES), lambda i: (0, 0)),  # w2
                pl.BlockSpec((OUT_FEATURES, 1), lambda i: (0, 0)),       # b2
            ],
            out_specs=pl.BlockSpec((OUT_FEATURES, tb), lambda i: (0, i)),  # lane-dense
        ),
        compiler_params=pltpu.CompilerParams(
            dimension_semantics=(pltpu.PARALLEL,), **cp_kwargs),
        cost_estimate=pl.CostEstimate(
            flops=flops, transcendentals=0, bytes_accessed=bytes_accessed),
    )(x, w1_t, b1_2d, w2_t, b2_2d)

    return out_t.T   # [2, B] -> [B, 2] (tiny)


def init_params(key):
    """Deterministic init mirroring PyTorch nn.Linear default U(-1/sqrt(fan_in), +)."""
    k1, k2, k3, k4 = jax.random.split(key, 4)
    bound1 = 1.0 / jnp.sqrt(IN_FEATURES)
    bound2 = 1.0 / jnp.sqrt(HIDDEN)
    # stored as [in, out] (transpose of PyTorch's [out, in]) for direct x @ W
    w1_t = jax.random.uniform(k1, (IN_FEATURES, HIDDEN), jnp.float32,
                              minval=-bound1, maxval=bound1)
    b1 = jax.random.uniform(k2, (HIDDEN,), jnp.float32,
                            minval=-bound1, maxval=bound1)
    w2_t = jax.random.uniform(k3, (HIDDEN, OUT_FEATURES), jnp.float32,
                              minval=-bound2, maxval=bound2)
    b2 = jax.random.uniform(k4, (OUT_FEATURES,), jnp.float32,
                            minval=-bound2, maxval=bound2)
    return w1_t, b1, w2_t, b2


if __name__ == "__main__":
    key = jax.random.PRNGKey(0)
    key_x, key_x2, key_p = jax.random.split(key, 3)

    w1_t, b1, w2_t, b2 = init_params(key_p)

    def ref_fn(x):
        return jnp.maximum(x @ w1_t + b1, 0.0) @ w2_t + b2

    # Small batch: single full-extent block, grid=(1,)
    B = 8
    x = jax.random.normal(key_x, (B, IN_FEATURES), dtype=jnp.float32)
    out = jax.block_until_ready(improved_nn_forward(x, w1_t, b1, w2_t, b2))
    assert out.shape == (B, OUT_FEATURES)
    assert jnp.allclose(out, ref_fn(x), atol=1e-4, rtol=1e-4)

    # Ragged multi-tile batch: exercises cdiv grid + masked partial final block
    B2 = 300
    x2 = jax.random.normal(key_x2, (B2, IN_FEATURES), dtype=jnp.float32)
    out2 = jax.block_until_ready(
        improved_nn_forward(x2, w1_t, b1, w2_t, b2, block_b=128))
    assert out2.shape == (B2, OUT_FEATURES)
    assert jnp.allclose(out2, ref_fn(x2), atol=1e-4, rtol=1e-4)

    print("KERNEL_OK")
</pallas_src>

<mosaic_0001>
module attributes {stable_mosaic.version = 11 : i64} {
  func.func @mlp_kernel(%arg0: i32, %arg1: memref<8x511xf32, #tpu.memory_space<vmem>>, %arg2: memref<511x32xf32, #tpu.memory_space<vmem>>, %arg3: memref<1x32xf32, #tpu.memory_space<vmem>>, %arg4: memref<32x2xf32, #tpu.memory_space<vmem>>, %arg5: memref<2x1xf32, #tpu.memory_space<vmem>>, %arg6: memref<2x8xf32, #tpu.memory_space<vmem>>) attributes {dimension_semantics = [#tpu.dimension_semantics<parallel>], iteration_bounds = array<i64: 1>, scalar_prefetch = 0 : i64, scratch_operands = 0 : i64, tpu.core_type = #tpu.core_type<tc>, window_params = [{transform_indices = @transform_0, window_bounds = array<i64: 8, 511>}, {pipeline_mode = #tpu.pipeline_mode<synchronous>, transform_indices = @transform_1, window_bounds = array<i64: 511, 32>}, {pipeline_mode = #tpu.pipeline_mode<synchronous>, transform_indices = @transform_2, window_bounds = array<i64: 1, 32>}, {pipeline_mode = #tpu.pipeline_mode<synchronous>, transform_indices = @transform_3, window_bounds = array<i64: 32, 2>}, {pipeline_mode = #tpu.pipeline_mode<synchronous>, transform_indices = @transform_4, window_bounds = array<i64: 2, 1>}, {transform_indices = @transform_5, window_bounds = array<i64: 2, 8>}]} {
    %c0 = arith.constant 0 : index
    %c0_0 = arith.constant 0 : index
    %0 = vector.load %arg1[%c0, %c0_0] : memref<8x511xf32, #tpu.memory_space<vmem>>, vector<8x511xf32>
    %c0_1 = arith.constant 0 : index
    %c0_2 = arith.constant 0 : index
    %1 = vector.load %arg2[%c0_1, %c0_2] : memref<511x32xf32, #tpu.memory_space<vmem>>, vector<511x32xf32>
    %cst = arith.constant dense<0.000000e+00> : vector<8x32xf32>
    %2 = tpu.matmul %0, %1, %cst {dimension_numbers = #tpu.dot_dimension_numbers<[1], [0], [0], [1], [0, 0, 1, 1], [], []>} : vector<8x511xf32>, vector<511x32xf32>, vector<8x32xf32> -> vector<8x32xf32>
    %c0_3 = arith.constant 0 : index
    %c0_4 = arith.constant 0 : index
    %3 = vector.load %arg3[%c0_3, %c0_4] : memref<1x32xf32, #tpu.memory_space<vmem>>, vector<1x32xf32>
    %4 = vector.broadcast %3 : vector<1x32xf32> to vector<8x32xf32>
    %5 = arith.addf %2, %4 : vector<8x32xf32>
    %cst_5 = arith.constant 0.000000e+00 : f32
    %6 = vector.broadcast %cst_5 : f32 to vector<8x32xf32>
    %7 = arith.maximumf %5, %6 : vector<8x32xf32>
    %c0_6 = arith.constant 0 : index
    %c0_7 = arith.constant 0 : index
    %8 = vector.load %arg4[%c0_6, %c0_7] : memref<32x2xf32, #tpu.memory_space<vmem>>, vector<32x2xf32>
    %cst_8 = arith.constant dense<0.000000e+00> : vector<2x8xf32>
    %9 = tpu.matmul %8, %7, %cst_8 {dimension_numbers = #tpu.dot_dimension_numbers<[0], [1], [1], [0], [0, 1, 1, 0], [], []>} : vector<32x2xf32>, vector<8x32xf32>, vector<2x8xf32> -> vector<2x8xf32>
    %c0_9 = arith.constant 0 : index
    %c0_10 = arith.constant 0 : index
    %10 = vector.load %arg5[%c0_9, %c0_10] : memref<2x1xf32, #tpu.memory_space<vmem>>, vector<2x1xf32>
    %11 = vector.broadcast %10 : vector<2x1xf32> to vector<2x8xf32>
    %12 = arith.addf %9, %11 : vector<2x8xf32>
    %c0_11 = arith.constant 0 : index
    %c0_12 = arith.constant 0 : index
    %13 = vector.load %arg6[%c0_11, %c0_12] : memref<2x8xf32, #tpu.memory_space<vmem>>, vector<2x8xf32>
    tpu.vector_store %arg6[%c0_11, %c0_12], %12 {strides = array<i32>} : memref<2x8xf32, #tpu.memory_space<vmem>>, vector<2x8xf32>,
    return
  }
  func.func @transform_0(%arg0: i32) -> (i32, i32) {
    %c0_i32 = arith.constant 0 : i32
    %c0_i32_0 = arith.constant 0 : i32
    return %arg0, %c0_i32 : i32, i32
  }
  func.func @transform_1(%arg0: i32) -> (i32, i32) {
    %c0_i32 = arith.constant 0 : i32
    %c0_i32_0 = arith.constant 0 : i32
    %c0_i32_1 = arith.constant 0 : i32
    return %c0_i32, %c0_i32_0 : i32, i32
  }
  func.func @transform_2(%arg0: i32) -> (i32, i32) {
    %c0_i32 = arith.constant 0 : i32
    %c0_i32_0 = arith.constant 0 : i32
    %c0_i32_1 = arith.constant 0 : i32
    return %c0_i32, %c0_i32_0 : i32, i32
  }
  func.func @transform_3(%arg0: i32) -> (i32, i32) {
    %c0_i32 = arith.constant 0 : i32
    %c0_i32_0 = arith.constant 0 : i32
    %c0_i32_1 = arith.constant 0 : i32
    return %c0_i32, %c0_i32_0 : i32, i32
  }
  func.func @transform_4(%arg0: i32) -> (i32, i32) {
    %c0_i32 = arith.constant 0 : i32
    %c0_i32_0 = arith.constant 0 : i32
    %c0_i32_1 = arith.constant 0 : i32
    return %c0_i32, %c0_i32_0 : i32, i32
  }
  func.func @transform_5(%arg0: i32) -> (i32, i32) {
    %c0_i32 = arith.constant 0 : i32
    %c0_i32_0 = arith.constant 0 : i32
    return %c0_i32, %arg0 : i32, i32
  }
}

</mosaic_0001>

<bundles_post_ra>
// kernel: improved_nn_forward.1
= control target key start
LH: loop header
LB: loop body
LE: loop exit
PB: predicated region body
PF: predicated region fallthrough
CT: control target
= control target key end

     0   :  { %vm96_vm0 = vcmask 1039360   ;;  %vm100_vm1 = vcmask 1046528   ;;  %s829_s0 = inlined_call_operand.vmem [shape: f32[8,511], index: 0, kind: input, shape index: {}]   ;;  %s830_s1 = inlined_call_operand.vmem [shape: f32[511,32], index: 1, kind: input, shape index: {}]   ;;  %s831_s2 = inlined_call_operand.vmem [shape: f32[1,32], index: 2, kind: input, shape index: {}]   ;;  %s832_s3 = inlined_call_operand.vmem [shape: f32[32,2], index: 3, kind: input, shape index: {}]   ;;  %s833_s4 = inlined_call_operand.vmem [shape: f32[2,1], index: 4, kind: input, shape index: {}]   ;;  %s834_s5 = inlined_call_operand.hbm [shape: f32[2,8], index: 5, kind: output, shape index: {}]  }
   0x1   :  { %v41_v0 = vld [vmem:[%s830_s1 + $0x80] sm:$0xff]  ;;  %v42_v1 = vld [vmem:[%s830_s1 + $0x88] sm:$0xff]  ;;  %v43_v11 = vld [vmem:[%s830_s1 + $0x90] sm:$0xff] }
   0x2   :  { %v25_v2 = vld [vmem:[%s830_s1] sm:$0xff]  ;;  %v462_v3 = vpack.c.bf16 %v42_v1, %v41_v0  ;;  %v26_v4 = vld [vmem:[%s830_s1 + $0x8] sm:$0xff]  ;;  %v44_v13 = vld [vmem:[%s830_s1 + $0x98] sm:$0xff] }
   0x3   :  { %v73_v5 = vld [vmem:[%s830_s1 + $0x180] sm:$0xff]  ;;  %v74_v6 = vld [vmem:[%s830_s1 + $0x188] sm:$0xff]  ;;  %v464_v7 = vpack.c.bf16 %v26_v4, %v25_v2  ;;  %v27_v14 = vld [vmem:[%s830_s1 + $0x10] sm:$0xff]  ;;  %v466_v16 = vpack.c.bf16 %v44_v13, %v43_v11 }
   0x4   :  { %v494_v8 = vpack.c.bf16 %v74_v6, %v73_v5  ;;  %v57_v9 = vld [vmem:[%s830_s1 + $0x100] sm:$0xff]  ;;  %v58_v10 = vld [vmem:[%s830_s1 + $0x108] sm:$0xff]  ;;  %463 = vmatprep.subr.bf16.mxu0 %v462_v3  ;;  %v28_v15 = vld [vmem:[%s830_s1 + $0x18] sm:$0xff] }
   0x5   :  { %v496_v12 = vpack.c.bf16 %v58_v10, %v57_v9  ;;  %465 = vmatpush3.bf16.msra.mxu0 %v464_v7  ;;  %v468_v17 = vpack.c.bf16 %v28_v15, %v27_v14  ;;  %v75_v18 = vld [vmem:[%s830_s1 + $0x190] sm:$0xff]  ;;  %v76_v19 = vld [vmem:[%s830_s1 + $0x198] sm:$0xff]  ;;  %v45_v23 = vld [vmem:[%s830_s1 + $0xa0] sm:$0xff] }
   0x6   :  { %495 = vmatprep.subr.bf16.mxu1 %v494_v8  ;;  %v59_v20 = vld [vmem:[%s830_s1 + $0x110] sm:$0xff]  ;;  %v498_v21 = vpack.c.bf16 %v76_v19, %v75_v18  ;;  %v60_v22 = vld [vmem:[%s830_s1 + $0x118] sm:$0xff]  ;;  %v46_v24 = vld [vmem:[%s830_s1 + $0xa8] sm:$0xff]  ;;  %467 = vmatprep.subr.bf16.mxu0 %v466_v16 }
   0x7   :  { %497 = vmatpush3.bf16.msra.mxu1 %v496_v12  ;;  %v500_v25 = vpack.c.bf16 %v60_v22, %v59_v20  ;;  %v470_v26 = vpack.c.bf16 %v46_v24, %v45_v23  ;;  %v29_v27 = vld [vmem:[%s830_s1 + $0x20] sm:$0xff]  ;;  %v30_v28 = vld [vmem:[%s830_s1 + $0x28] sm:$0xff]  ;;  %v47_v35 = vld [vmem:[%s830_s1 + $0xb0] sm:$0xff] }
   0x8   :  { %v77_v29 = vld [vmem:[%s830_s1 + $0x1a0] sm:$0xff]  ;;  %499 = vmatprep.subr.bf16.mxu1 %v498_v21  ;;  %v78_v30 = vld [vmem:[%s830_s1 + $0x1a8] sm:$0xff]  ;;  %v472_v33 = vpack.c.bf16 %v30_v28, %v29_v27  ;;  %v48_v36 = vld [vmem:[%s830_s1 + $0xb8] sm:$0xff] }
   0x9   :  { %v61_v31 = vld [vmem:[%s830_s1 + $0x120] sm:$0xff]  ;;  %v62_v32 = vld [vmem:[%s830_s1 + $0x128] sm:$0xff]  ;;  %469 = vmatpush3.bf16.msra.mxu0 %v468_v17  ;;  %v502_v34 = vpack.c.bf16 %v78_v30, %v77_v29  ;;  %v31_v37 = vld [vmem:[%s830_s1 + $0x30] sm:$0xff]  ;;  %v474_v39 = vpack.c.bf16 %v48_v36, %v47_v35 }
   0xa   :  { %471 = vmatprep.subr.bf16.mxu0 %v470_v26  ;;  %v504_v38 = vpack.c.bf16 %v62_v32, %v61_v31  ;;  %v32_v40 = vld [vmem:[%s830_s1 + $0x38] sm:$0xff]  ;;  %v79_v41 = vld [vmem:[%s830_s1 + $0x1b0] sm:$0xff]  ;;  %v49_v46 = vld [vmem:[%s830_s1 + $0xc0] sm:$0xff] }
   0xb   :  { %501 = vmatpush3.bf16.msra.mxu1 %v500_v25  ;;  %v80_v42 = vld [vmem:[%s830_s1 + $0x1b8] sm:$0xff]  ;;  %v63_v44 = vld [vmem:[%s830_s1 + $0x130] sm:$0xff]  ;;  %v50_v47 = vld [vmem:[%s830_s1 + $0xc8] sm:$0xff]  ;;  %v476_v48 = vpack.c.bf16 %v32_v40, %v31_v37 }
   0xc   :  { %503 = vmatprep.subr.bf16.mxu1 %v502_v34  ;;  %v506_v43 = vpack.c.bf16 %v80_v42, %v79_v41  ;;  %v64_v45 = vld [vmem:[%s830_s1 + $0x138] sm:$0xff]  ;;  %v81_v49 = vld [vmem:[%s830_s1 + $0x1c0] sm:$0xff]  ;;  %v82_v50 = vld [vmem:[%s830_s1 + $0x1c8] sm:$0xff]  ;;  %v478_v52 = vpack.c.bf16 %v50_v47, %v49_v46 }
   0xd   :  { %473 = vmatpush3.bf16.msra.mxu0 %v472_v33  ;;  %v508_v51 = vpack.c.bf16 %v64_v45, %v63_v44  ;;  %v33_v53 = vld [vmem:[%s830_s1 + $0x40] sm:$0xff]  ;;  %v34_v54 = vld [vmem:[%s830_s1 + $0x48] sm:$0xff]  ;;  %v510_v56 = vpack.c.bf16 %v82_v50, %v81_v49  ;;  %v51_v58 = vld [vmem:[%s830_s1 + $0xd0] sm:$0xff] }
   0xe   :  { %475 = vmatprep.subr.bf16.mxu0 %v474_v39  ;;  %v65_v55 = vld [vmem:[%s830_s1 + $0x140] sm:$0xff]  ;;  %v66_v57 = vld [vmem:[%s830_s1 + $0x148] sm:$0xff]  ;;  %v52_v59 = vld [vmem:[%s830_s1 + $0xd8] sm:$0xff]  ;;  %v480_v62 = vpack.c.bf16 %v34_v54, %v33_v53 }
   0xf   :  { %505 = vmatpush3.bf16.msra.mxu1 %v504_v38  ;;  %v83_v60 = vld [vmem:[%s830_s1 + $0x1d0] sm:$0xff]  ;;  %v84_v61 = vld [vmem:[%s830_s1 + $0x1d8] sm:$0xff]  ;;  %v512_v63 = vpack.c.bf16 %v66_v57, %v65_v55  ;;  %v482_v0 = vpack.c.bf16 %v52_v59, %v51_v58  ;;  %v53_v6 = vld [vmem:[%s830_s1 + $0xe0] sm:$0xff] }
  0x10   :  { %507 = vmatprep.subr.bf16.mxu1 %v506_v43  ;;  %v35_v1 = vld [vmem:[%s830_s1 + $0x50] sm:$0xff]  ;;  %v36_v2 = vld [vmem:[%s830_s1 + $0x58] sm:$0xff]  ;;  %v514_v4 = vpack.c.bf16 %v84_v61, %v83_v60  ;;  %v54_v7 = vld [vmem:[%s830_s1 + $0xe8] sm:$0xff] }
  0x11   :  { %477 = vmatpush3.bf16.msra.mxu0 %v476_v48  ;;  %v67_v3 = vld [vmem:[%s830_s1 + $0x150] sm:$0xff]  ;;  %v68_v5 = vld [vmem:[%s830_s1 + $0x158] sm:$0xff]  ;;  %v85_v8 = vld [vmem:[%s830_s1 + $0x1e0] sm:$0xff]  ;;  %v484_v10 = vpack.c.bf16 %v36_v2, %v35_v1  ;;  %v486_v14 = vpack.c.bf16 %v54_v7, %v53_v6 }
  0x12   :  { %479 = vmatprep.subr.bf16.mxu0 %v478_v52  ;;  %v86_v9 = vld [vmem:[%s830_s1 + $0x1e8] sm:$0xff]  ;;  %v37_v11 = vld [vmem:[%s830_s1 + $0x60] sm:$0xff]  ;;  %v516_v13 = vpack.c.bf16 %v68_v5, %v67_v3  ;;  %v55_v19 = vld [vmem:[%s830_s1 + $0xf0] sm:$0xff] }
  0x13   :  { %509 = vmatpush3.bf16.msra.mxu1 %v508_v51  ;;  %v38_v12 = vld [vmem:[%s830_s1 + $0x68] sm:$0xff]  ;;  %v69_v15 = vld [vmem:[%s830_s1 + $0x160] sm:$0xff]  ;;  %v518_v18 = vpack.c.bf16 %v86_v9, %v85_v8  ;;  %v56_v20 = vld [vmem:[%s830_s1 + $0xf8] sm:$0xff] }
  0x14   :  { %511 = vmatprep.subr.bf16.mxu1 %v510_v56  ;;  %v70_v16 = vld [vmem:[%s830_s1 + $0x168] sm:$0xff]  ;;  %v24_v21 = vld [vmem:[%s829_s0 + $0x18] sm:$0xff]  ;;  %v87_v22 = vld [vmem:[%s830_s1 + $0x1f0] sm:$0xff]  ;;  %v488_v25 = vpack.c.bf16 %v38_v12, %v37_v11 }
  0x15   :  { %481 = vmatpush3.bf16.msra.mxu0 %v480_v62  ;;  %v22_v17 = vld [vmem:[%s829_s0 + $0x8] sm:$0xff]  ;;  %v88_v23 = vld [vmem:[%s830_s1 + $0x1f8] sm:$0x7f]  ;;  %382 = vmatprep.mubr.msk.f32.mxu1 %vm96_vm0, %v24_v21  ;;  %v245_v24 = vld [vmem:[%s832_s3] sm:$0xff] }
  0x16   :  { %483 = vmatprep.subr.bf16.mxu0 %v482_v0  ;;  %168 = vmatprep.mubr.f32.mxu0 %v22_v17 }
  0x17   :  { %513 = vmatpush3.bf16.msra.mxu1 %v512_v63  ;;  %255 = vxpose.xlu0.b32.start [1/4] (short) (narrow) %v245_v24, 8 }
  0x18   :  { %515 = vmatprep.subr.bf16.mxu1 %v514_v4 }
  0x19   :  { %485 = vmatpush3.bf16.msra.mxu0 %v484_v10 }
  0x1a   :  { %10 = vsyncpa [#allocation3], 0  ;;  %487 = vmatprep.subr.bf16.mxu0 %v486_v14  ;;  %v520_v26 = vpack.c.bf16 %v70_v16, %v69_v15  ;;  %v490_v27 = vpack.c.bf16 %v56_v20, %v55_v19  ;;  %v39_v28 = vld [vmem:[%s830_s1 + $0x70] sm:$0xff]  ;;  %v40_v29 = vld [vmem:[%s830_s1 + $0x78] sm:$0xff]  ;;  %v522_v31 = vpack.c.bf16 %v88_v23, %v87_v22  ;;  %vm558_vm2 = vmmov 1  }
  0x1b   :  { %517 = vmatpush3.bf16.msra.mxu1 %v516_v13  ;;  %v246_v30 = vld [vmem:[%s832_s3 + $0x8] sm:$0xff]  ;;  %v71_v32 = vld [vmem:[%s830_s1 + $0x170] sm:$0xff]  ;;  %v72_v33 = vld [vmem:[%s830_s1 + $0x178] sm:$0xff]  ;;  %v492_v34 = vpack.c.bf16 %v40_v29, %v39_v28  ;;  %v559_v40 = vmov 0.0   ;;  %vm560_vm4 = vmmov 0   ;;  %v561_v42 = vmov 0  }
  0x1c   :  { %519 = vmatprep.subr.bf16.mxu1 %v518_v18  ;;  %vm523_vm3 = vmpackc.low %vm100_vm1, %vm558_vm2  ;;  %256 = vxpose.xlu0.b32.cont [2/4] (short) (narrow) %v246_v30, 8  ;;  %v525_v35 = vpack.c.bf16 %v72_v33, %v71_v32  ;;  %v247_v36 = vld [vmem:[%s832_s3 + $0x10] sm:$0xff]  ;;  %v21_v37 = vld [vmem:[%s829_s0] sm:$0xff]  ;;  %vm287_vm5 = vcmask 261120   ;;  %vm364_vm6 = vcmask 58368  }
  0x1d   :  { %489 = vmatpush3.bf16.msra.mxu0 %v488_v25  ;;  %v23_v38 = vld [vmem:[%s829_s0 + $0x10] sm:$0xff]  ;;  %v248_v39 = vld [vmem:[%s832_s3 + $0x18] sm:$0xff]  ;;  %v249_v41 = vld [vmem:[%s833_s4] sm:$0x3]  ;;  %532 = vset.pattern.permute.xlu1 %v561_v42  ;;  %s562_s3 = smov [#allocation2]  }
  0x1e   :  { %491 = vmatprep.subr.bf16.mxu0 %v490_v27  ;;  %252 = vperm.xlu1 %532, %v249_v41   ;;  %v380_v44 = vld [vmem:[%s831_s2] ss:$0 sm:$0xff]  ;;  %s372_s4 = sshll.u32 %s562_s3, 4  ;;  %s373_s4 = int_to_ptr.vmem [resolvable:$true] %s372_s4 }
  0x1f   :  { %521 = vmatpush3.bf16.msra.mxu1 %v520_v26  ;;  %s534_s2 = scalar_lea.vmem %s373_s4, 32  ;;  %p539_p1 = scmp.lt.s32.totalorder %s373_s4, %s373_s4 }
  0x20   :  { %524 = vmatprep.subr.msk.bf16.mxu1 %vm523_vm3, %v522_v31  ;;  %257 = vxpose.xlu0.b32.cont [3/4] (short) (narrow) %v247_v36, 8  ;;  %p535_p0 = scmp.ne.s32.totalorder %s373_s4, %s534_s2  ;;  %p540_p2 = scmp.lt.s32.totalorder %s534_s2, %s534_s2 }
  0x21   :  { %493 = vmatpush3.bf16.msra.mxu0 %v492_v34 }
  0x22   :  { %457 = vmatprep.subr.mxu0 %v559_v40  ;;  %p541_p3 = por %p540_p2, %p539_p1 }
  0x23   :  { %526 = vmatpush3.bf16.msra.mxu1 %v525_v35 }
  0x24   :  { %169 = vmatmul.mubr.f32.vlgmr.msra.gmra.mrb[0].mxu0 %v21_v37  ;;  %258 = vxpose.xlu0.b32.end [4/4] (short) (narrow) %v248_v39, 8  ;;  %p542_p4 = pnand %p541_p3, %p535_p0 }
  0x25   :  { %459 = vmatprep.mubr.msk.f32.mxu0 %vm560_vm4, %v559_v40 }
  0x26   :  { %239 = vmatmul.mubr.f32.vlgmr.msra.gmra.mrb[0].mxu1 %v23_v38 }
  0x4d   :  { %533 = vset.pattern.permute.xlu0 %v561_v42 }
  0x98   :  { %v271_v53 = vpop.trf.xlu0 }
  0x9d   :  { %v253_v54 = vpop.permute.xlu1 %252 }
  0xf7   :  { %v417_v43 = vpop.f32.mrb[0].mxu0 }
  0xf8   :  { %v418_v45 = vpop.f32.mrb[1].mxu0 }
  0xf9   :  { %v452_v46 = vpop.f32.mrb[0].mxu1  ;;  %v419_v47 = vadd.f32 %v418_v45, %v417_v43 }
  0xfa   :  { %v453_v48 = vpop.f32.mrb[1].mxu1 }
  0xfb   :  { %v454_v49 = vadd.f32 %v453_v48, %v452_v46  ;;  %v171_v50 = vadd.f32 %v419_v47, %v380_v44 }
  0xfd   :  { %v241_v51 = vadd.f32 %v454_v49, %v171_v50 }
  0xff   :  { %v244_v52 = vmax.f32 %v241_v51, 0.0 }
 0x101   :  { %458 = vmatpush3.xpose.msk.msra.mxu0 %vm287_vm5, %v244_v52 }
 0x104   :  { %460 = vmatmul.mubr.msk.f32.vlgmr.msra.gmra.mrb[2].mxu0 %vm287_vm5, %v271_v53 }
 0x1d7   :  { %v360_v55 = vpop.f32.mrb[2].mxu0 }
 0x1d8   :  { %v361_v56 = vadd.f32 %v360_v55, %v253_v54  ;;  %v461_v57 = vpop.f32.mrb[3].mxu0 }
 0x1da   :  { %365 = vst.msk [vmem:[#allocation2] sm:$0x3] %vm364_vm6, %v361_v56 }
 0x1db   :  { %545 = shalt.err (!%p542_p4)
}
 0x1dc   :  { %s546_s16 = scalar_lea.hbm %s834_s5, 32 }
 0x1dd   :  { %p547_p5 = scmp.ne.s32.totalorder %s834_s5, %s546_s16  ;;  %p550_p6 = scmp.lt.u32.totalorder %s546_s16, %s834_s5 }
 0x1df   :  { %p552_p7 = pnand %p550_p6, %p547_p5 }
 0x1e1   :  { %555 = shalt.err (!%p552_p7)
}
 0x1e2   :  { %375 = dma.vmem_to_hbm [thread:$0]  %s373_s4, 32, %s834_s5, [#allocation3]  }
 0x1e3   :  { %556 = dma.done.wait [#allocation3], 32  }
 0x1e4   :  { %557 = vsyncadd [#allocation3], 4294967264 }
 0x1e5   :  { %379 = vsyncpa [#allocation3], 1 }

</bundles_post_ra>
